<compile_context>
chip_gen: v6e
topology: v6e:2x2x1
jax: 0.10.0
libtpu: 0.0.40
codegen_flags: <defaults>
</compile_context>

<pallas_src>
import math
from functools import partial

import jax
import jax.numpy as jnp
from jax.experimental import pallas as pl
from jax.experimental.pallas import tpu as pltpu


# ----------------------------------------------------------------------------- utils

def _pick_tile(dim, target, align):
    """Largest tile <= target that is a multiple of `align` and divides dim.
    A full-extent dim is always legal (exempt from the (8,128) rule)."""
    if dim <= target:
        return dim
    t = (target // align) * align
    while t >= align:
        if dim % t == 0:
            return t
        t -= align
    # TODO(synk): for awkward/prime dims switch to a pl.cdiv grid + masking instead
    # of falling back to the full (untiled) dim.
    return dim


def _vmem_limit(est_bytes, *, headroom=2.0, floor=8 << 20, ceil=64 << 20):
    # Sized for v7x's 64 MiB physical VMEM; v5e/v6e have 128 MiB so this is safe there.
    return int(max(floor, min(est_bytes * headroom, ceil)))


def _default_mxu_dtype():
    """bf16 MXU operands run at full rate on v6e/v7x; v5e and older have no bf16
    VPU path, so keep f32 operands there."""
    try:
        kind = jax.devices()[0].device_kind.lower()
    except Exception:
        return None
    for old in ("v2", "v3", "v4", "v5"):
        if old in kind:
            return None
    return jnp.bfloat16


# -------------------------------------------------------------- projection GEMM kernel

def _gemm_bias_kernel(a_ref, b_ref, bias_ref, o_ref, acc_ref, *, mxu_dtype):
    """out = a @ b + bias, K-accumulated in an f32 VMEM scratch."""
    @pl.when(pl.program_id(2) == 0)
    def _():
        acc_ref[...] = jnp.zeros_like(acc_ref)

    a = a_ref[...]
    b = b_ref[...]
    if mxu_dtype is not None:
        a = a.astype(mxu_dtype)
        b = b.astype(mxu_dtype)
    acc_ref[...] += jnp.dot(a, b, preferred_element_type=jnp.float32)

    @pl.when(pl.program_id(2) == pl.num_programs(2) - 1)
    def _():
        o_ref[...] = (acc_ref[...] + bias_ref[...]).astype(o_ref.dtype)


def _gemm_bias(a, b, bias, *, out_dtype, mxu_dtype=None):
    M, K = a.shape
    K2, Nout = b.shape
    assert K == K2 and bias.shape == (1, Nout)

    tm = _pick_tile(M, 256, 8)
    tn = _pick_tile(Nout, 256, 128)
    tk = _pick_tile(K, 512, 128)
    grid = (M // tm, Nout // tn, K // tk)

    a_b = jnp.dtype(a.dtype).itemsize
    b_b = jnp.dtype(b.dtype).itemsize
    o_b = jnp.dtype(out_dtype).itemsize
    io = 2 * (tm * tk * a_b + tk * tn * b_b + tn * 4 + tm * tn * o_b)   # dbl-buffered
    scr = tm * tn * 4
    tmp = 2 * tm * tn * 4
    vmem = _vmem_limit(io + scr + tmp)

    # TODO(synk): when the grid collapses so the weight block index is constant,
    # single-buffer it (pipeline_mode=pl.Buffered(1)) to halve its VMEM footprint.
    return pl.pallas_call(
        partial(_gemm_bias_kernel, mxu_dtype=mxu_dtype),
        out_shape=jax.ShapeDtypeStruct((M, Nout), out_dtype),
        grid_spec=pltpu.PrefetchScalarGridSpec(
            num_scalar_prefetch=0,
            grid=grid,
            in_specs=[pl.BlockSpec((tm, tk), lambda i, j, k: (i, k)),
                      pl.BlockSpec((tk, tn), lambda i, j, k: (k, j)),
                      pl.BlockSpec((1, tn), lambda i, j, k: (0, j))],
            out_specs=pl.BlockSpec((tm, tn), lambda i, j, k: (i, j)),
            scratch_shapes=[pltpu.VMEM((tm, tn), jnp.float32)]),
        compiler_params=pltpu.CompilerParams(
            dimension_semantics=("parallel", "parallel", "arbitrary"),
            vmem_limit_bytes=vmem),
    )(a, b, bias)


# ------------------------------------------------------------- flash attention kernel

def _flash_attn_kernel(q_ref, k_ref, v_ref, o_ref, m_sc, l_sc, acc_sc, *, mxu_dtype):
    """Online-softmax attention over one (batch, Lq-tile) block, iterating Lk tiles."""
    kv = pl.program_id(2)

    @pl.when(kv == 0)
    def _():
        m_sc[...] = jnp.full_like(m_sc, -jnp.inf)
        l_sc[...] = jnp.zeros_like(l_sc)
        acc_sc[...] = jnp.zeros_like(acc_sc)

    q = q_ref[...]
    k = k_ref[...]
    v = v_ref[...]
    if mxu_dtype is not None:
        q = q.astype(mxu_dtype)
        k = k.astype(mxu_dtype)
        v = v.astype(mxu_dtype)

    # energy[b, q, k]; the 1/sqrt(embed_size) softmax scale is folded into Wq upstream.
    # TODO(synk): inspect pl.lower_as_mlir for a per-batch vxpose on k here; if the XLU
    # transpose shows up at production shapes, project K into a (B, E, Lk) layout.
    s = jnp.einsum('bqd,bkd->bqk', q, k, preferred_element_type=jnp.float32)

    m_prev = m_sc[...]
    m_new = jnp.maximum(m_prev, s.max(-1, keepdims=True))
    alpha = jnp.exp(m_prev - m_new)
    p = jnp.exp(s - m_new)
    l_sc[...] = alpha * l_sc[...] + p.sum(-1, keepdims=True)
    p_mm = p.astype(mxu_dtype) if mxu_dtype is not None else p.astype(v.dtype)
    acc_sc[...] = alpha * acc_sc[...] + jnp.einsum(
        'bqk,bkd->bqd', p_mm, v, preferred_element_type=jnp.float32)
    m_sc[...] = m_new

    @pl.when(kv == pl.num_programs(2) - 1)
    def _():
        # Approximate reciprocal runs on the EUP slot (~free); attention rows sum to 1
        # only to ~1e-3 relative (within the stated tolerances).
        o_ref[...] = (acc_sc[...] *
                      pl.reciprocal(l_sc[...], approx=True)).astype(o_ref.dtype)


def _flash_attention(q, k, v, *, mxu_dtype=None, out_dtype=None):
    N, Lq, E = q.shape
    Lk = k.shape[1]
    if out_dtype is None:
        out_dtype = q.dtype

    # Bt = 1: batch does not raise the MXU M dim (each batch element is its own
    # matmul), and a small Bt maximizes "parallel" grid steps so v7x's two
    # TensorCores both get work whenever N >= 2. Tq carries the MXU M dimension.
    Bt = 1
    Tq = _pick_tile(Lq, 256, 8)
    Tk = _pick_tile(Lk, 512, 128)
    grid = (N // Bt, Lq // Tq, Lk // Tk)

    in_b = jnp.dtype(q.dtype).itemsize
    o_b = jnp.dtype(out_dtype).itemsize
    io = 2 * (Bt * Tq * E * in_b + 2 * Bt * Tk * E * in_b + Bt * Tq * E * o_b)
    scr = Bt * Tq * (2 + E) * 4
    tmp = 4 * Bt * Tq * Tk * 4 + 2 * Bt * Tq * E * 4
    vmem = _vmem_limit(io + scr + tmp)

    return pl.pallas_call(
        partial(_flash_attn_kernel, mxu_dtype=mxu_dtype),
        out_shape=jax.ShapeDtypeStruct((N, Lq, E), out_dtype),
        grid_spec=pltpu.PrefetchScalarGridSpec(
            num_scalar_prefetch=0,
            grid=grid,
            in_specs=[pl.BlockSpec((Bt, Tq, E), lambda b, qi, ki: (b, qi, 0)),
                      pl.BlockSpec((Bt, Tk, E), lambda b, qi, ki: (b, ki, 0)),
                      pl.BlockSpec((Bt, Tk, E), lambda b, qi, ki: (b, ki, 0))],
            out_specs=pl.BlockSpec((Bt, Tq, E), lambda b, qi, ki: (b, qi, 0)),
            scratch_shapes=[pltpu.VMEM((Bt, Tq, 1), jnp.float32),
                            pltpu.VMEM((Bt, Tq, 1), jnp.float32),
                            pltpu.VMEM((Bt, Tq, E), jnp.float32)]),
        compiler_params=pltpu.CompilerParams(
            dimension_semantics=("parallel", "parallel", "arbitrary"),
            vmem_limit_bytes=vmem),
    )(q, k, v)


# ------------------------------------------------------------------------ full forward

def prepare_params(params, *, embed_size):
    """One-time parameter prep (off the forward path): transpose Linear weights to
    (in, out) and fold the 1/sqrt(embed_size) softmax scale into Wq."""
    wq, wk, wv, wo, bo = params
    inv_scale = 1.0 / math.sqrt(float(embed_size))
    return {
        "wq": jnp.asarray(wq).T * inv_scale,
        "wk": jnp.asarray(wk).T,
        "wv": jnp.asarray(wv).T,
        "wo": jnp.asarray(wo).T,
        "bo": jnp.asarray(bo).reshape(1, -1),
    }


def multi_head_attention(values, keys, query, prepared, *, embed_size, heads,
                         mxu_dtype="auto"):
    assert heads == 1, "reference forward only runs with heads == 1 (see module note)"
    N, Lq, E = query.shape
    Lk = keys.shape[1]
    assert values.shape[1] == Lk and E == embed_size

    if mxu_dtype == "auto":
        mxu_dtype = _default_mxu_dtype()

    # Intermediate Q/K/V carried in the MXU operand dtype (bf16 on v6e/v7x): halves
    # HBM traffic between the projection GEMMs and the attention kernel. The final
    # output stays in the input dtype.
    inter_dtype = mxu_dtype if mxu_dtype is not None else query.dtype

    zero_bias = jnp.zeros((1, E), jnp.float32)
    q2 = _gemm_bias(query.reshape(N * Lq, E), prepared["wq"], zero_bias,
                    out_dtype=inter_dtype, mxu_dtype=mxu_dtype)
    k2 = _gemm_bias(keys.reshape(N * Lk, E), prepared["wk"], zero_bias,
                    out_dtype=inter_dtype, mxu_dtype=mxu_dtype)
    v2 = _gemm_bias(values.reshape(N * Lk, E), prepared["wv"], zero_bias,
                    out_dtype=inter_dtype, mxu_dtype=mxu_dtype)

    ctx = _flash_attention(q2.reshape(N, Lq, E), k2.reshape(N, Lk, E),
                           v2.reshape(N, Lk, E),
                           mxu_dtype=mxu_dtype, out_dtype=inter_dtype)

    out = _gemm_bias(ctx.reshape(N * Lq, E), prepared["wo"], prepared["bo"],
                     out_dtype=query.dtype, mxu_dtype=mxu_dtype)
    return out.reshape(N, Lq, E)


# --------------------------------------------------------------------------- reference

def reference_jax(values, keys, query, params, *, embed_size, heads):
    # Pure-JAX transcription of the PyTorch forward (heads == 1).
    wq, wk, wv, wo, bo = params
    N, Lq, E = query.shape
    head_dim = embed_size // heads
    v = values.reshape(N, -1, heads, head_dim)
    k = keys.reshape(N, -1, heads, head_dim)
    q = query.reshape(N, -1, heads, head_dim)
    v = jnp.einsum('nlhd,ed->nlhe', v, wv)
    k = jnp.einsum('nlhd,ed->nlhe', k, wk)
    q = jnp.einsum('nlhd,ed->nlhe', q, wq)
    energy = jnp.einsum('nqhd,nkhd->nhqk', q, k) / math.sqrt(float(embed_size))
    attn = jax.nn.softmax(energy, axis=3)
    out = jnp.einsum('nhql,nlhd->nqhd', attn, v).reshape(N, Lq, embed_size)
    return jnp.einsum('nqe,fe->nqf', out, wo) + bo


if __name__ == "__main__":
    embed_size = 32
    heads = 1                      # see note: reference forward requires heads == 1
    head_dim = embed_size // heads
    N, seq = 2, 8

    key = jax.random.PRNGKey(0)
    ks = jax.random.split(key, 8)
    # Deterministic parameter init (Linear weight shape = (out_features, in_features)).
    wq = jax.random.normal(ks[0], (embed_size, head_dim), jnp.float32) * 0.1
    wk = jax.random.normal(ks[1], (embed_size, head_dim), jnp.float32) * 0.1
    wv = jax.random.normal(ks[2], (embed_size, head_dim), jnp.float32) * 0.1
    wo = jax.random.normal(ks[3], (embed_size, embed_size), jnp.float32) * 0.1
    bo = jax.random.normal(ks[4], (embed_size,), jnp.float32) * 0.1
    params = (wq, wk, wv, wo, bo)

    values = jax.random.normal(ks[5], (N, seq, embed_size), jnp.float32)
    keys_in = jax.random.normal(ks[6], (N, seq, embed_size), jnp.float32)
    query = jax.random.normal(ks[7], (N, seq, embed_size), jnp.float32)

    ref = reference_jax(values, keys_in, query, params,
                        embed_size=embed_size, heads=heads)

    # One-time parameter prep, off the forward path.
    prepared = prepare_params(params, embed_size=embed_size)

    # Portable f32-operand path (what v5e should use).
    fwd_f32 = jax.jit(partial(multi_head_attention, embed_size=embed_size,
                              heads=heads, mxu_dtype=None))
    out = jax.block_until_ready(fwd_f32(values, keys_in, query, prepared))
    assert out.shape == (N, seq, embed_size)
    assert jnp.allclose(out, ref, atol=5e-3, rtol=5e-3), "mismatch vs reference (f32)"

    # Auto path: bf16 MXU operands + bf16 intermediates on v6e/v7x (f32 accumulation
    # and f32 softmax), f32 operands on v5e and older.
    fwd_auto = jax.jit(partial(multi_head_attention, embed_size=embed_size,
                               heads=heads, mxu_dtype="auto"))
    out_auto = jax.block_until_ready(fwd_auto(values, keys_in, query, prepared))
    assert jnp.allclose(out_auto, ref, atol=5e-2, rtol=5e-2), \
        "mismatch vs reference (auto MXU dtype)"

    print("KERNEL_OK")
</pallas_src>

<mosaic_0001>
module attributes {stable_mosaic.version = 11 : i64} {
  func.func @_gemm_bias_kernel(%arg0: i32, %arg1: i32, %arg2: i32, %arg3: memref<16x32xf32, #tpu.memory_space<vmem>>, %arg4: memref<32x32xf32, #tpu.memory_space<vmem>>, %arg5: memref<1x32xf32, #tpu.memory_space<vmem>>, %arg6: memref<16x32xf32, #tpu.memory_space<vmem>>, %arg7: memref<16x32xf32, #tpu.memory_space<vmem>>) attributes {dimension_semantics = [#tpu.dimension_semantics<parallel>, #tpu.dimension_semantics<parallel>, #tpu.dimension_semantics<arbitrary>], iteration_bounds = array<i64: 1, 1, 1>, scalar_prefetch = 0 : i64, scratch_operands = 1 : i64, tpu.core_type = #tpu.core_type<tc>, window_params = [{transform_indices = @transform_0, window_bounds = array<i64: 16, 32>}, {transform_indices = @transform_1, window_bounds = array<i64: 32, 32>}, {transform_indices = @transform_2, window_bounds = array<i64: 1, 32>}, {transform_indices = @transform_3, window_bounds = array<i64: 16, 32>}]} {
    %c0_i32 = arith.constant 0 : i32
    %0 = arith.cmpi eq, %arg2, %c0_i32 : i32
    %1 = arith.extui %0 : i1 to i32
    %c0_i32_0 = arith.constant 0 : i32
    %2 = arith.cmpi ne, %1, %c0_i32_0 : i32
    scf.if %2 {
      %cst_10 = arith.constant 0.000000e+00 : f32
      %12 = vector.broadcast %cst_10 : f32 to vector<16x32xf32>
      %c0_11 = arith.constant 0 : index
      %c0_12 = arith.constant 0 : index
      %13 = vector.load %arg7[%c0_11, %c0_12] : memref<16x32xf32, #tpu.memory_space<vmem>>, vector<16x32xf32>
      tpu.vector_store %arg7[%c0_11, %c0_12], %12 {strides = array<i32>} : memref<16x32xf32, #tpu.memory_space<vmem>>, vector<16x32xf32>,
    } else {
    }
    %c0 = arith.constant 0 : index
    %c0_1 = arith.constant 0 : index
    %3 = vector.load %arg3[%c0, %c0_1] : memref<16x32xf32, #tpu.memory_space<vmem>>, vector<16x32xf32>
    %c0_2 = arith.constant 0 : index
    %c0_3 = arith.constant 0 : index
    %4 = vector.load %arg4[%c0_2, %c0_3] : memref<32x32xf32, #tpu.memory_space<vmem>>, vector<32x32xf32>
    %c0_4 = arith.constant 0 : index
    %c0_5 = arith.constant 0 : index
    %5 = vector.load %arg7[%c0_4, %c0_5] : memref<16x32xf32, #tpu.memory_space<vmem>>, vector<16x32xf32>
    %cst = arith.constant dense<0.000000e+00> : vector<16x32xf32>
    %6 = tpu.matmul %3, %4, %cst {dimension_numbers = #tpu.dot_dimension_numbers<[1], [0], [0], [1], [0, 0, 1, 1], [], []>} : vector<16x32xf32>, vector<32x32xf32>, vector<16x32xf32> -> vector<16x32xf32>
    %7 = arith.addf %5, %6 : vector<16x32xf32>
    %c0_6 = arith.constant 0 : index
    %c0_7 = arith.constant 0 : index
    %8 = vector.load %arg7[%c0_6, %c0_7] : memref<16x32xf32, #tpu.memory_space<vmem>>, vector<16x32xf32>
    tpu.vector_store %arg7[%c0_6, %c0_7], %7 {strides = array<i32>} : memref<16x32xf32, #tpu.memory_space<vmem>>, vector<16x32xf32>,
    %c0_i32_8 = arith.constant 0 : i32
    %9 = arith.cmpi eq, %arg2, %c0_i32_8 : i32
    %10 = arith.extui %9 : i1 to i32
    %c0_i32_9 = arith.constant 0 : i32
    %11 = arith.cmpi ne, %10, %c0_i32_9 : i32
    scf.if %11 {
      %c0_10 = arith.constant 0 : index
      %c0_11 = arith.constant 0 : index
      %12 = vector.load %arg7[%c0_10, %c0_11] : memref<16x32xf32, #tpu.memory_space<vmem>>, vector<16x32xf32>
      %c0_12 = arith.constant 0 : index
      %c0_13 = arith.constant 0 : index
      %13 = vector.load %arg5[%c0_12, %c0_13] : memref<1x32xf32, #tpu.memory_space<vmem>>, vector<1x32xf32>
      %14 = vector.broadcast %13 : vector<1x32xf32> to vector<16x32xf32>
      %15 = arith.addf %12, %14 : vector<16x32xf32>
      %c0_14 = arith.constant 0 : index
      %c0_15 = arith.constant 0 : index
      %16 = vector.load %arg6[%c0_14, %c0_15] : memref<16x32xf32, #tpu.memory_space<vmem>>, vector<16x32xf32>
      tpu.vector_store %arg6[%c0_14, %c0_15], %15 {strides = array<i32>} : memref<16x32xf32, #tpu.memory_space<vmem>>, vector<16x32xf32>,
    } else {
    }
    return
  }
  func.func @transform_0(%arg0: i32, %arg1: i32, %arg2: i32) -> (i32, i32) {
    %c0_i32 = arith.constant 0 : i32
    return %arg0, %arg2 : i32, i32
  }
  func.func @transform_1(%arg0: i32, %arg1: i32, %arg2: i32) -> (i32, i32) {
    %c0_i32 = arith.constant 0 : i32
    return %arg2, %arg1 : i32, i32
  }
  func.func @transform_2(%arg0: i32, %arg1: i32, %arg2: i32) -> (i32, i32) {
    %c0_i32 = arith.constant 0 : i32
    %c0_i32_0 = arith.constant 0 : i32
    return %c0_i32, %arg1 : i32, i32
  }
  func.func @transform_3(%arg0: i32, %arg1: i32, %arg2: i32) -> (i32, i32) {
    %c0_i32 = arith.constant 0 : i32
    return %arg0, %arg1 : i32, i32
  }
}

module attributes {stable_mosaic.version = 11 : i64} {
  func.func @_gemm_bias_kernel(%arg0: i32, %arg1: i32, %arg2: i32, %arg3: memref<16x32xf32, #tpu.memory_space<vmem>>, %arg4: memref<32x32xf32, #tpu.memory_space<vmem>>, %arg5: memref<1x32xf32, #tpu.memory_space<vmem>>, %arg6: memref<16x32xf32, #tpu.memory_space<vmem>>, %arg7: memref<16x32xf32, #tpu.memory_space<vmem>>) attributes {dimension_semantics = [#tpu.dimension_semantics<parallel>, #tpu.dimension_semantics<parallel>, #tpu.dimension_semantics<arbitrary>], iteration_bounds = array<i64: 1, 1, 1>, scalar_prefetch = 0 : i64, scratch_operands = 1 : i64, tpu.core_type = #tpu.core_type<tc>, window_params = [{transform_indices = @transform_0, window_bounds = array<i64: 16, 32>}, {transform_indices = @transform_1, window_bounds = array<i64: 32, 32>}, {transform_indices = @transform_2, window_bounds = array<i64: 1, 32>}, {transform_indices = @transform_3, window_bounds = array<i64: 16, 32>}]} {
    %c0_i32 = arith.constant 0 : i32
    %0 = arith.cmpi eq, %arg2, %c0_i32 : i32
    %1 = arith.extui %0 : i1 to i32
    %c0_i32_0 = arith.constant 0 : i32
    %2 = arith.cmpi ne, %1, %c0_i32_0 : i32
    scf.if %2 {
      %cst_10 = arith.constant 0.000000e+00 : f32
      %12 = vector.broadcast %cst_10 : f32 to vector<16x32xf32>
      %c0_11 = arith.constant 0 : index
      %c0_12 = arith.constant 0 : index
      %13 = vector.load %arg7[%c0_11, %c0_12] : memref<16x32xf32, #tpu.memory_space<vmem>>, vector<16x32xf32>
      tpu.vector_store %arg7[%c0_11, %c0_12], %12 {strides = array<i32>} : memref<16x32xf32, #tpu.memory_space<vmem>>, vector<16x32xf32>,
    } else {
    }
    %c0 = arith.constant 0 : index
    %c0_1 = arith.constant 0 : index
    %3 = vector.load %arg3[%c0, %c0_1] : memref<16x32xf32, #tpu.memory_space<vmem>>, vector<16x32xf32>
    %c0_2 = arith.constant 0 : index
    %c0_3 = arith.constant 0 : index
    %4 = vector.load %arg4[%c0_2, %c0_3] : memref<32x32xf32, #tpu.memory_space<vmem>>, vector<32x32xf32>
    %c0_4 = arith.constant 0 : index
    %c0_5 = arith.constant 0 : index
    %5 = vector.load %arg7[%c0_4, %c0_5] : memref<16x32xf32, #tpu.memory_space<vmem>>, vector<16x32xf32>
    %cst = arith.constant dense<0.000000e+00> : vector<16x32xf32>
    %6 = tpu.matmul %3, %4, %cst {dimension_numbers = #tpu.dot_dimension_numbers<[1], [0], [0], [1], [0, 0, 1, 1], [], []>} : vector<16x32xf32>, vector<32x32xf32>, vector<16x32xf32> -> vector<16x32xf32>
    %7 = arith.addf %5, %6 : vector<16x32xf32>
    %c0_6 = arith.constant 0 : index
    %c0_7 = arith.constant 0 : index
    %8 = vector.load %arg7[%c0_6, %c0_7] : memref<16x32xf32, #tpu.memory_space<vmem>>, vector<16x32xf32>
    tpu.vector_store %arg7[%c0_6, %c0_7], %7 {strides = array<i32>} : memref<16x32xf32, #tpu.memory_space<vmem>>, vector<16x32xf32>,
    %c0_i32_8 = arith.constant 0 : i32
    %9 = arith.cmpi eq, %arg2, %c0_i32_8 : i32
    %10 = arith.extui %9 : i1 to i32
    %c0_i32_9 = arith.constant 0 : i32
    %11 = arith.cmpi ne, %10, %c0_i32_9 : i32
    scf.if %11 {
      %c0_10 = arith.constant 0 : index
      %c0_11 = arith.constant 0 : index
      %12 = vector.load %arg7[%c0_10, %c0_11] : memref<16x32xf32, #tpu.memory_space<vmem>>, vector<16x32xf32>
      %c0_12 = arith.constant 0 : index
      %c0_13 = arith.constant 0 : index
      %13 = vector.load %arg5[%c0_12, %c0_13] : memref<1x32xf32, #tpu.memory_space<vmem>>, vector<1x32xf32>
      %14 = vector.broadcast %13 : vector<1x32xf32> to vector<16x32xf32>
      %15 = arith.addf %12, %14 : vector<16x32xf32>
      %c0_14 = arith.constant 0 : index
      %c0_15 = arith.constant 0 : index
      %16 = vector.load %arg6[%c0_14, %c0_15] : memref<16x32xf32, #tpu.memory_space<vmem>>, vector<16x32xf32>
      tpu.vector_store %arg6[%c0_14, %c0_15], %15 {strides = array<i32>} : memref<16x32xf32, #tpu.memory_space<vmem>>, vector<16x32xf32>,
    } else {
    }
    return
  }
  func.func @transform_0(%arg0: i32, %arg1: i32, %arg2: i32) -> (i32, i32) {
    %c0_i32 = arith.constant 0 : i32
    return %arg0, %arg2 : i32, i32
  }
  func.func @transform_1(%arg0: i32, %arg1: i32, %arg2: i32) -> (i32, i32) {
    %c0_i32 = arith.constant 0 : i32
    return %arg2, %arg1 : i32, i32
  }
  func.func @transform_2(%arg0: i32, %arg1: i32, %arg2: i32) -> (i32, i32) {
    %c0_i32 = arith.constant 0 : i32
    %c0_i32_0 = arith.constant 0 : i32
    return %c0_i32, %arg1 : i32, i32
  }
  func.func @transform_3(%arg0: i32, %arg1: i32, %arg2: i32) -> (i32, i32) {
    %c0_i32 = arith.constant 0 : i32
    return %arg0, %arg1 : i32, i32
  }
}

module attributes {stable_mosaic.version = 11 : i64} {
  func.func @_flash_attn_kernel(%arg0: i32, %arg1: i32, %arg2: i32, %arg3: memref<1x8x32xf32, #tpu.memory_space<vmem>>, %arg4: memref<1x8x32xf32, #tpu.memory_space<vmem>>, %arg5: memref<1x8x32xf32, #tpu.memory_space<vmem>>, %arg6: memref<1x8x32xf32, #tpu.memory_space<vmem>>, %arg7: memref<1x8x1xf32, #tpu.memory_space<vmem>>, %arg8: memref<1x8x1xf32, #tpu.memory_space<vmem>>, %arg9: memref<1x8x32xf32, #tpu.memory_space<vmem>>) attributes {dimension_semantics = [#tpu.dimension_semantics<parallel>, #tpu.dimension_semantics<parallel>, #tpu.dimension_semantics<arbitrary>], iteration_bounds = array<i64: 2, 1, 1>, scalar_prefetch = 0 : i64, scratch_operands = 3 : i64, tpu.core_type = #tpu.core_type<tc>, window_params = [{transform_indices = @transform_0, window_bounds = array<i64: 1, 8, 32>}, {transform_indices = @transform_1, window_bounds = array<i64: 1, 8, 32>}, {transform_indices = @transform_2, window_bounds = array<i64: 1, 8, 32>}, {transform_indices = @transform_3, window_bounds = array<i64: 1, 8, 32>}]} {
    %c0_i32 = arith.constant 0 : i32
    %0 = arith.cmpi eq, %arg2, %c0_i32 : i32
    %1 = arith.extui %0 : i1 to i32
    %c0_i32_0 = arith.constant 0 : i32
    %2 = arith.cmpi ne, %1, %c0_i32_0 : i32
    scf.if %2 {
      %cst_32 = arith.constant 0xFF800000 : f32
      %32 = vector.broadcast %cst_32 : f32 to vector<1x8x1xf32>
      %c0_33 = arith.constant 0 : index
      %c0_34 = arith.constant 0 : index
      %c0_35 = arith.constant 0 : index
      %33 = vector.load %arg7[%c0_33, %c0_34, %c0_35] : memref<1x8x1xf32, #tpu.memory_space<vmem>>, vector<1x8x1xf32>
      tpu.vector_store %arg7[%c0_33, %c0_34, %c0_35], %32 {strides = array<i32>} : memref<1x8x1xf32, #tpu.memory_space<vmem>>, vector<1x8x1xf32>,
      %cst_36 = arith.constant 0.000000e+00 : f32
      %34 = vector.broadcast %cst_36 : f32 to vector<1x8x1xf32>
      %c0_37 = arith.constant 0 : index
      %c0_38 = arith.constant 0 : index
      %c0_39 = arith.constant 0 : index
      %35 = vector.load %arg8[%c0_37, %c0_38, %c0_39] : memref<1x8x1xf32, #tpu.memory_space<vmem>>, vector<1x8x1xf32>
      tpu.vector_store %arg8[%c0_37, %c0_38, %c0_39], %34 {strides = array<i32>} : memref<1x8x1xf32, #tpu.memory_space<vmem>>, vector<1x8x1xf32>,
      %cst_40 = arith.constant 0.000000e+00 : f32
      %36 = vector.broadcast %cst_40 : f32 to vector<1x8x32xf32>
      %c0_41 = arith.constant 0 : index
      %c0_42 = arith.constant 0 : index
      %c0_43 = arith.constant 0 : index
      %37 = vector.load %arg9[%c0_41, %c0_42, %c0_43] : memref<1x8x32xf32, #tpu.memory_space<vmem>>, vector<1x8x32xf32>
      tpu.vector_store %arg9[%c0_41, %c0_42, %c0_43], %36 {strides = array<i32>} : memref<1x8x32xf32, #tpu.memory_space<vmem>>, vector<1x8x32xf32>,
    } else {
    }
    %c0 = arith.constant 0 : index
    %c0_1 = arith.constant 0 : index
    %c0_2 = arith.constant 0 : index
    %3 = vector.load %arg3[%c0, %c0_1, %c0_2] : memref<1x8x32xf32, #tpu.memory_space<vmem>>, vector<1x8x32xf32>
    %c0_3 = arith.constant 0 : index
    %c0_4 = arith.constant 0 : index
    %c0_5 = arith.constant 0 : index
    %4 = vector.load %arg4[%c0_3, %c0_4, %c0_5] : memref<1x8x32xf32, #tpu.memory_space<vmem>>, vector<1x8x32xf32>
    %c0_6 = arith.constant 0 : index
    %c0_7 = arith.constant 0 : index
    %c0_8 = arith.constant 0 : index
    %5 = vector.load %arg5[%c0_6, %c0_7, %c0_8] : memref<1x8x32xf32, #tpu.memory_space<vmem>>, vector<1x8x32xf32>
    "tpu.trace_start"() <{level = 10 : i32, message = "bqd,bkd->bqk"}> : () -> ()
    %cst = arith.constant dense<0.000000e+00> : vector<1x8x8xf32>
    %6 = tpu.matmul %3, %4, %cst {dimension_numbers = #tpu.dot_dimension_numbers<[2], [2], [1], [1], [0, 0, 0, 1, 1, 1], [0], [0]>} : vector<1x8x32xf32>, vector<1x8x32xf32>, vector<1x8x8xf32> -> vector<1x8x8xf32>
    "tpu.trace_stop"() : () -> ()
    %c0_9 = arith.constant 0 : index
    %c0_10 = arith.constant 0 : index
    %c0_11 = arith.constant 0 : index
    %7 = vector.load %arg7[%c0_9, %c0_10, %c0_11] : memref<1x8x1xf32, #tpu.memory_space<vmem>>, vector<1x8x1xf32>
    %cst_12 = arith.constant dense<0xFF800000> : vector<1x8xf32>
    %8 = vector.multi_reduction <maximumf>, %6, %cst_12 [2] : vector<1x8x8xf32> to vector<1x8xf32>
    %9 = vector.shape_cast %8 : vector<1x8xf32> to vector<1x8x1xf32>
    %10 = arith.maximumf %7, %9 : vector<1x8x1xf32>
    %11 = arith.subf %7, %10 : vector<1x8x1xf32>
    %12 = math.exp %11 : vector<1x8x1xf32>
    %13 = vector.broadcast %10 : vector<1x8x1xf32> to vector<1x8x8xf32>
    %14 = arith.subf %6, %13 : vector<1x8x8xf32>
    %15 = math.exp %14 : vector<1x8x8xf32>
    %c0_13 = arith.constant 0 : index
    %c0_14 = arith.constant 0 : index
    %c0_15 = arith.constant 0 : index
    %16 = vector.load %arg8[%c0_13, %c0_14, %c0_15] : memref<1x8x1xf32, #tpu.memory_space<vmem>>, vector<1x8x1xf32>
    %17 = arith.mulf %12, %16 : vector<1x8x1xf32>
    %cst_16 = arith.constant dense<0.000000e+00> : vector<1x8xf32>
    %18 = vector.multi_reduction <add>, %15, %cst_16 [2] : vector<1x8x8xf32> to vector<1x8xf32>
    %19 = vector.shape_cast %18 : vector<1x8xf32> to vector<1x8x1xf32>
    %20 = arith.addf %17, %19 : vector<1x8x1xf32>
    %c0_17 = arith.constant 0 : index
    %c0_18 = arith.constant 0 : index
    %c0_19 = arith.constant 0 : index
    %21 = vector.load %arg8[%c0_17, %c0_18, %c0_19] : memref<1x8x1xf32, #tpu.memory_space<vmem>>, vector<1x8x1xf32>
    tpu.vector_store %arg8[%c0_17, %c0_18, %c0_19], %20 {strides = array<i32>} : memref<1x8x1xf32, #tpu.memory_space<vmem>>, vector<1x8x1xf32>,
    %c0_20 = arith.constant 0 : index
    %c0_21 = arith.constant 0 : index
    %c0_22 = arith.constant 0 : index
    %22 = vector.load %arg9[%c0_20, %c0_21, %c0_22] : memref<1x8x32xf32, #tpu.memory_space<vmem>>, vector<1x8x32xf32>
    %23 = vector.broadcast %12 : vector<1x8x1xf32> to vector<1x8x32xf32>
    %24 = arith.mulf %23, %22 : vector<1x8x32xf32>
    "tpu.trace_start"() <{level = 10 : i32, message = "bqk,bkd->bqd"}> : () -> ()
    %cst_23 = arith.constant dense<0.000000e+00> : vector<1x8x32xf32>
    %25 = tpu.matmul %15, %5, %cst_23 {dimension_numbers = #tpu.dot_dimension_numbers<[2], [1], [1], [2], [0, 0, 0, 1, 1, 2], [0], [0]>} : vector<1x8x8xf32>, vector<1x8x32xf32>, vector<1x8x32xf32> -> vector<1x8x32xf32>
    "tpu.trace_stop"() : () -> ()
    %26 = arith.addf %24, %25 : vector<1x8x32xf32>
    %c0_24 = arith.constant 0 : index
    %c0_25 = arith.constant 0 : index
    %c0_26 = arith.constant 0 : index
    %27 = vector.load %arg9[%c0_24, %c0_25, %c0_26] : memref<1x8x32xf32, #tpu.memory_space<vmem>>, vector<1x8x32xf32>
    tpu.vector_store %arg9[%c0_24, %c0_25, %c0_26], %26 {strides = array<i32>} : memref<1x8x32xf32, #tpu.memory_space<vmem>>, vector<1x8x32xf32>,
    %c0_27 = arith.constant 0 : index
    %c0_28 = arith.constant 0 : index
    %c0_29 = arith.constant 0 : index
    %28 = vector.load %arg7[%c0_27, %c0_28, %c0_29] : memref<1x8x1xf32, #tpu.memory_space<vmem>>, vector<1x8x1xf32>
    tpu.vector_store %arg7[%c0_27, %c0_28, %c0_29], %10 {strides = array<i32>} : memref<1x8x1xf32, #tpu.memory_space<vmem>>, vector<1x8x1xf32>,
    %c0_i32_30 = arith.constant 0 : i32
    %29 = arith.cmpi eq, %arg2, %c0_i32_30 : i32
    %30 = arith.extui %29 : i1 to i32
    %c0_i32_31 = arith.constant 0 : i32
    %31 = arith.cmpi ne, %30, %c0_i32_31 : i32
    scf.if %31 {
      %c0_32 = arith.constant 0 : index
      %c0_33 = arith.constant 0 : index
      %c0_34 = arith.constant 0 : index
      %32 = vector.load %arg9[%c0_32, %c0_33, %c0_34] : memref<1x8x32xf32, #tpu.memory_space<vmem>>, vector<1x8x32xf32>
      %c0_35 = arith.constant 0 : index
      %c0_36 = arith.constant 0 : index
      %c0_37 = arith.constant 0 : index
      %33 = vector.load %arg8[%c0_35, %c0_36, %c0_37] : memref<1x8x1xf32, #tpu.memory_space<vmem>>, vector<1x8x1xf32>
      %34 = tpu.reciprocal %33 {approx = true} : vector<1x8x1xf32> -> vector<1x8x1xf32>
      %35 = vector.broadcast %34 : vector<1x8x1xf32> to vector<1x8x32xf32>
      %36 = arith.mulf %32, %35 : vector<1x8x32xf32>
      %c0_38 = arith.constant 0 : index
      %c0_39 = arith.constant 0 : index
      %c0_40 = arith.constant 0 : index
      %37 = vector.load %arg6[%c0_38, %c0_39, %c0_40] : memref<1x8x32xf32, #tpu.memory_space<vmem>>, vector<1x8x32xf32>
      tpu.vector_store %arg6[%c0_38, %c0_39, %c0_40], %36 {strides = array<i32>} : memref<1x8x32xf32, #tpu.memory_space<vmem>>, vector<1x8x32xf32>,
    } else {
    }
    return
  }
  func.func @transform_0(%arg0: i32, %arg1: i32, %arg2: i32) -> (i32, i32, i32) {
    %c0_i32 = arith.constant 0 : i32
    %c0_i32_0 = arith.constant 0 : i32
    return %arg0, %arg1, %c0_i32 : i32, i32, i32
  }
  func.func @transform_1(%arg0: i32, %arg1: i32, %arg2: i32) -> (i32, i32, i32) {
    %c0_i32 = arith.constant 0 : i32
    %c0_i32_0 = arith.constant 0 : i32
    return %arg0, %arg2, %c0_i32 : i32, i32, i32
  }
  func.func @transform_2(%arg0: i32, %arg1: i32, %arg2: i32) -> (i32, i32, i32) {
    %c0_i32 = arith.constant 0 : i32
    %c0_i32_0 = arith.constant 0 : i32
    return %arg0, %arg2, %c0_i32 : i32, i32, i32
  }
  func.func @transform_3(%arg0: i32, %arg1: i32, %arg2: i32) -> (i32, i32, i32) {
    %c0_i32 = arith.constant 0 : i32
    %c0_i32_0 = arith.constant 0 : i32
    return %arg0, %arg1, %c0_i32 : i32, i32, i32
  }
}

module attributes {stable_mosaic.version = 11 : i64} {
  func.func @_gemm_bias_kernel(%arg0: i32, %arg1: i32, %arg2: i32, %arg3: memref<16x32xf32, #tpu.memory_space<vmem>>, %arg4: memref<32x32xf32, #tpu.memory_space<vmem>>, %arg5: memref<1x32xf32, #tpu.memory_space<vmem>>, %arg6: memref<16x32xf32, #tpu.memory_space<vmem>>, %arg7: memref<16x32xf32, #tpu.memory_space<vmem>>) attributes {dimension_semantics = [#tpu.dimension_semantics<parallel>, #tpu.dimension_semantics<parallel>, #tpu.dimension_semantics<arbitrary>], iteration_bounds = array<i64: 1, 1, 1>, scalar_prefetch = 0 : i64, scratch_operands = 1 : i64, tpu.core_type = #tpu.core_type<tc>, window_params = [{transform_indices = @transform_0, window_bounds = array<i64: 16, 32>}, {transform_indices = @transform_1, window_bounds = array<i64: 32, 32>}, {transform_indices = @transform_2, window_bounds = array<i64: 1, 32>}, {transform_indices = @transform_3, window_bounds = array<i64: 16, 32>}]} {
    %c0_i32 = arith.constant 0 : i32
    %0 = arith.cmpi eq, %arg2, %c0_i32 : i32
    %1 = arith.extui %0 : i1 to i32
    %c0_i32_0 = arith.constant 0 : i32
    %2 = arith.cmpi ne, %1, %c0_i32_0 : i32
    scf.if %2 {
      %cst_10 = arith.constant 0.000000e+00 : f32
      %12 = vector.broadcast %cst_10 : f32 to vector<16x32xf32>
      %c0_11 = arith.constant 0 : index
      %c0_12 = arith.constant 0 : index
      %13 = vector.load %arg7[%c0_11, %c0_12] : memref<16x32xf32, #tpu.memory_space<vmem>>, vector<16x32xf32>
      tpu.vector_store %arg7[%c0_11, %c0_12], %12 {strides = array<i32>} : memref<16x32xf32, #tpu.memory_space<vmem>>, vector<16x32xf32>,
    } else {
    }
    %c0 = arith.constant 0 : index
    %c0_1 = arith.constant 0 : index
    %3 = vector.load %arg3[%c0, %c0_1] : memref<16x32xf32, #tpu.memory_space<vmem>>, vector<16x32xf32>
    %c0_2 = arith.constant 0 : index
    %c0_3 = arith.constant 0 : index
    %4 = vector.load %arg4[%c0_2, %c0_3] : memref<32x32xf32, #tpu.memory_space<vmem>>, vector<32x32xf32>
    %c0_4 = arith.constant 0 : index
    %c0_5 = arith.constant 0 : index
    %5 = vector.load %arg7[%c0_4, %c0_5] : memref<16x32xf32, #tpu.memory_space<vmem>>, vector<16x32xf32>
    %cst = arith.constant dense<0.000000e+00> : vector<16x32xf32>
    %6 = tpu.matmul %3, %4, %cst {dimension_numbers = #tpu.dot_dimension_numbers<[1], [0], [0], [1], [0, 0, 1, 1], [], []>} : vector<16x32xf32>, vector<32x32xf32>, vector<16x32xf32> -> vector<16x32xf32>
    %7 = arith.addf %5, %6 : vector<16x32xf32>
    %c0_6 = arith.constant 0 : index
    %c0_7 = arith.constant 0 : index
    %8 = vector.load %arg7[%c0_6, %c0_7] : memref<16x32xf32, #tpu.memory_space<vmem>>, vector<16x32xf32>
    tpu.vector_store %arg7[%c0_6, %c0_7], %7 {strides = array<i32>} : memref<16x32xf32, #tpu.memory_space<vmem>>, vector<16x32xf32>,
    %c0_i32_8 = arith.constant 0 : i32
    %9 = arith.cmpi eq, %arg2, %c0_i32_8 : i32
    %10 = arith.extui %9 : i1 to i32
    %c0_i32_9 = arith.constant 0 : i32
    %11 = arith.cmpi ne, %10, %c0_i32_9 : i32
    scf.if %11 {
      %c0_10 = arith.constant 0 : index
      %c0_11 = arith.constant 0 : index
      %12 = vector.load %arg7[%c0_10, %c0_11] : memref<16x32xf32, #tpu.memory_space<vmem>>, vector<16x32xf32>
      %c0_12 = arith.constant 0 : index
      %c0_13 = arith.constant 0 : index
      %13 = vector.load %arg5[%c0_12, %c0_13] : memref<1x32xf32, #tpu.memory_space<vmem>>, vector<1x32xf32>
      %14 = vector.broadcast %13 : vector<1x32xf32> to vector<16x32xf32>
      %15 = arith.addf %12, %14 : vector<16x32xf32>
      %c0_14 = arith.constant 0 : index
      %c0_15 = arith.constant 0 : index
      %16 = vector.load %arg6[%c0_14, %c0_15] : memref<16x32xf32, #tpu.memory_space<vmem>>, vector<16x32xf32>
      tpu.vector_store %arg6[%c0_14, %c0_15], %15 {strides = array<i32>} : memref<16x32xf32, #tpu.memory_space<vmem>>, vector<16x32xf32>,
    } else {
    }
    return
  }
  func.func @transform_0(%arg0: i32, %arg1: i32, %arg2: i32) -> (i32, i32) {
    %c0_i32 = arith.constant 0 : i32
    return %arg0, %arg2 : i32, i32
  }
  func.func @transform_1(%arg0: i32, %arg1: i32, %arg2: i32) -> (i32, i32) {
    %c0_i32 = arith.constant 0 : i32
    return %arg2, %arg1 : i32, i32
  }
  func.func @transform_2(%arg0: i32, %arg1: i32, %arg2: i32) -> (i32, i32) {
    %c0_i32 = arith.constant 0 : i32
    %c0_i32_0 = arith.constant 0 : i32
    return %c0_i32, %arg1 : i32, i32
  }
  func.func @transform_3(%arg0: i32, %arg1: i32, %arg2: i32) -> (i32, i32) {
    %c0_i32 = arith.constant 0 : i32
    return %arg0, %arg1 : i32, i32
  }
}

</mosaic_0001>

<bundles_post_ra>
// kernel: multi_head_attention.6
= control target key start
LH: loop header
LB: loop body
LE: loop exit
PB: predicated region body
PF: predicated region fallthrough
CT: control target
= control target key end

     0   :  { %vm18_vm0 = vcmask 261120   ;;  %v156_v2 = vmov 0.0   ;;  %s212_s1 = inlined_call_operand.vmem [shape: f32[32,32], index: 1, kind: input, shape index: {}]   ;;  %s213_s0 = inlined_call_operand.vmem [shape: f32[16,32], index: 0, kind: input, shape index: {}]   ;;  %s214_s2 = inlined_call_operand.vmem [shape: f32[1,32], index: 2, kind: input, shape index: {}]   ;;  %s215_s3 = inlined_call_operand.vmem [shape: f32[16,32], index: 3, kind: output, shape index: {}]  }
   0x1   :  { %v26_v0 = vld [vmem:[%s212_s1 + $0x18] sm:$0xff]  ;;  %v25_v1 = vld [vmem:[%s212_s1 + $0x10] sm:$0xff]  ;;  %20 = vst.msk [vmem:[#allocation2 + $0x8] sm:$0xff] %vm18_vm0, %v156_v2  ;;  %19 = vst.msk [vmem:[#allocation2] sm:$0xff] %vm18_vm0, %v156_v2 }
   0x2   :  { %144 = vmatprep.subr.mxu0 %v26_v0  ;;  %v21_v3 = vld [vmem:[%s213_s0] sm:$0xff]  ;;  %v24_v4 = vld [vmem:[%s212_s1 + $0x8] sm:$0xff] }
   0x3   :  { %145 = vmatpush3.msra.mxu0 %v26_v0  ;;  %152 = vmatprep.mubr.msk.f32.mxu0 %vm18_vm0, %v21_v3  ;;  %v23_v5 = vld [vmem:[%s212_s1] sm:$0xff]  ;;  %v22_v6 = vld [vmem:[%s213_s0 + $0x8] sm:$0xff] }
   0x4   :  { %146 = vmatprep.subr.mxu0 %v25_v1  ;;  %v137_v13 = vld [vmem:[%s214_s2] ss:$0 sm:$0xff] }
   0x5   :  { %147 = vmatpush3.msra.mxu0 %v25_v1 }
   0x6   :  { %148 = vmatprep.subr.mxu0 %v24_v4 }
   0x7   :  { %149 = vmatpush3.msra.mxu0 %v24_v4 }
   0x8   :  { %150 = vmatprep.subr.mxu0 %v23_v5  ;;  %v28_v7 = vld [vmem:[#allocation2 + $0x8] sm:$0xff]  ;;  %v27_v9 = vld [vmem:[#allocation2] sm:$0xff] }
   0x9   :  { %151 = vmatpush3.msra.mxu0 %v23_v5 }
   0xa   :  { %153 = vmatmul.mubr.msk.f32.vlgmr.msra.gmra.mxu0 %vm18_vm0, %v22_v6 }
  0xca   :  { %v154_v8 = vpop.f32.mrf.mxu0 }
  0xcb   :  { %v112_v10 = vadd.f32 %v154_v8, %v28_v7 }
  0xcc   :  { %v102_v11 = vpop.f32.mrf.mxu0 }
  0xcd   :  { %114 = vst.msk [vmem:[#allocation2 + $0x8] sm:$0xff] %vm18_vm0, %v112_v10  ;;  %v111_v12 = vadd.f32 %v102_v11, %v27_v9 }
  0xcf   :  { %113 = vst.msk [vmem:[#allocation2] sm:$0xff] %vm18_vm0, %v111_v12 }
  0xd4   :  { %v119_v14 = vld [vmem:[#allocation2 + $0x8] sm:$0xff] }
  0xd5   :  { %v128_v15 = vadd.f32 %v137_v13, %v119_v14 }
  0xd6   :  { %v118_v16 = vld [vmem:[#allocation2] sm:$0xff] }
  0xd7   :  { %130 = vst.msk [vmem:[%s215_s3 + $0x8] sm:$0xff] %vm18_vm0, %v128_v15  ;;  %v127_v17 = vadd.f32 %v137_v13, %v118_v16 }
  0xd9   :  { %129 = vst.msk [vmem:[%s215_s3] sm:$0xff] %vm18_vm0, %v127_v17 }

// kernel: multi_head_attention.7
= control target key start
LH: loop header
LB: loop body
LE: loop exit
PB: predicated region body
PF: predicated region fallthrough
CT: control target
= control target key end

     0   :  { %8 = vsyncpa [#allocation4], 0  ;;  %s282_s0 = inlined_call_operand.hbm [shape: f32[16,32], index: 0, kind: input, shape index: {}]   ;;  %s283_s1 = inlined_call_operand.hbm [shape: f32[32,32], index: 1, kind: input, shape index: {}]   ;;  %s284_s2 = inlined_call_operand.vmem [shape: f32[1,32], index: 2, kind: input, shape index: {}]   ;;  %s285_s3 = inlined_call_operand.vmem [shape: f32[16,32], index: 3, kind: output, shape index: {}]  }
   0x1   :  { %9 = vsyncpa [#allocation6], 0  ;;  %s234_s12 = smov [#allocation3]  }
   0x2   :  { %s15_s13 = sshll.u32 %s234_s12, 4  ;;  %s16_s13 = int_to_ptr.vmem [resolvable:$true] %s15_s13 }
   0x3   :  { %s198_s14 = scalar_lea.vmem %s16_s13, 256  ;;  %p203_p1 = scmp.lt.s32.totalorder %s16_s13, %s16_s13 }
   0x4   :  { %p199_p0 = scmp.ne.s32.totalorder %s16_s13, %s198_s14  ;;  %p204_p2 = scmp.lt.s32.totalorder %s198_s14, %s198_s14 }
   0x6   :  { %p205_p3 = por %p204_p2, %p203_p1 }
   0x8   :  { %p206_p4 = pnand %p205_p3, %p199_p0 }
   0xa   :  { %209 = shalt.err (!%p206_p4)
}
   0xb   :  { %s235_s15 = smov 128   ;;  %s236_s16 = smov 8  }
   0xc   :  { %21 = dma.hbm_to_vmem [thread:$0]  %s282_s0, 256, %s16_s13, [#allocation4], %s235_s15, %s235_s15, %s236_s16  }
   0xd   :  { %s237_s19 = smov [#allocation5]  }
   0xe   :  { %s27_s20 = sshll.u32 %s237_s19, 4  ;;  %s28_s20 = int_to_ptr.vmem [resolvable:$true] %s27_s20 }
   0xf   :  { %s218_s21 = scalar_lea.vmem %s28_s20, 512  ;;  %p223_p6 = scmp.lt.s32.totalorder %s28_s20, %s28_s20 }
  0x10   :  { %p219_p5 = scmp.ne.s32.totalorder %s28_s20, %s218_s21  ;;  %p224_p7 = scmp.lt.s32.totalorder %s218_s21, %s218_s21 }
  0x12   :  { %p225_p8 = por %p224_p7, %p223_p6 }
  0x14   :  { %p226_p9 = pnand %p225_p8, %p219_p5 }
  0x16   :  { %229 = shalt.err (!%p226_p9)
}
  0x17   :  { %33 = dma.hbm_to_vmem [thread:$0]  %s283_s1, 512, %s28_s20, [#allocation6], %s235_s15, %s235_s15, %s236_s16  }
  0x18   :  { %230 = dma.done.wait [#allocation4], 256  }
  0x19   :  { %231 = vsyncadd [#allocation4], 4294967040 }
  0x1a   :  { %232 = dma.done.wait [#allocation6], 512  }
  0x1b   :  { %233 = vsyncadd [#allocation6], 4294966784  ;;  %vm46_vm0 = vcmask 261120   ;;  %v238_v0 = vmov 0.0   ;;  %v54_v1 = vld [vmem:[#allocation5 + $0x18] sm:$0xff]  ;;  %v53_v2 = vld [vmem:[#allocation5 + $0x10] sm:$0xff] }
  0x1c   :  { %48 = vst.msk [vmem:[#allocation2 + $0x8] sm:$0xff] %vm46_vm0, %v238_v0  ;;  %47 = vst.msk [vmem:[#allocation2] sm:$0xff] %vm46_vm0, %v238_v0  ;;  %174 = vmatprep.subr.mxu0 %v54_v1  ;;  %v49_v3 = vld [vmem:[#allocation3] sm:$0xff]  ;;  %v52_v4 = vld [vmem:[#allocation5 + $0x8] sm:$0xff] }
  0x1d   :  { %175 = vmatpush3.msra.mxu0 %v54_v1  ;;  %182 = vmatprep.mubr.msk.f32.mxu0 %vm46_vm0, %v49_v3  ;;  %v51_v5 = vld [vmem:[#allocation5] sm:$0xff]  ;;  %v50_v6 = vld [vmem:[#allocation3 + $0x8] sm:$0xff] }
  0x1e   :  { %176 = vmatprep.subr.mxu0 %v53_v2  ;;  %v167_v13 = vld [vmem:[%s284_s2] ss:$0 sm:$0xff] }
  0x1f   :  { %177 = vmatpush3.msra.mxu0 %v53_v2 }
  0x20   :  { %178 = vmatprep.subr.mxu0 %v52_v4 }
  0x21   :  { %179 = vmatpush3.msra.mxu0 %v52_v4 }
  0x22   :  { %180 = vmatprep.subr.mxu0 %v51_v5 }
  0x23   :  { %181 = vmatpush3.msra.mxu0 %v51_v5  ;;  %v56_v7 = vld [vmem:[#allocation2 + $0x8] sm:$0xff]  ;;  %v55_v9 = vld [vmem:[#allocation2] sm:$0xff] }
  0x24   :  { %183 = vmatmul.mubr.msk.f32.vlgmr.msra.gmra.mxu0 %vm46_vm0, %v50_v6 }
  0xe4   :  { %v184_v8 = vpop.f32.mrf.mxu0 }
  0xe5   :  { %v140_v10 = vadd.f32 %v184_v8, %v56_v7 }
  0xe6   :  { %v130_v11 = vpop.f32.mrf.mxu0 }
  0xe7   :  { %142 = vst.msk [vmem:[#allocation2 + $0x8] sm:$0xff] %vm46_vm0, %v140_v10  ;;  %v139_v12 = vadd.f32 %v130_v11, %v55_v9 }
  0xe9   :  { %141 = vst.msk [vmem:[#allocation2] sm:$0xff] %vm46_vm0, %v139_v12 }
  0xee   :  { %v147_v14 = vld [vmem:[#allocation2 + $0x8] sm:$0xff] }
  0xef   :  { %v156_v15 = vadd.f32 %v167_v13, %v147_v14 }
  0xf0   :  { %v146_v16 = vld [vmem:[#allocation2] sm:$0xff] }
  0xf1   :  { %158 = vst.msk [vmem:[%s285_s3 + $0x8] sm:$0xff] %vm46_vm0, %v156_v15  ;;  %v155_v17 = vadd.f32 %v167_v13, %v146_v16 }
  0xf3   :  { %157 = vst.msk [vmem:[%s285_s3] sm:$0xff] %vm46_vm0, %v155_v17 }
  0xf4   :  { %163 = vsyncpa [#allocation4], 1 }
  0xf5   :  { %164 = vsyncpa [#allocation6], 1 }

// kernel: multi_head_attention.8
= control target key start
LH: loop header
LB: loop body
LE: loop exit
PB: predicated region body
PF: predicated region fallthrough
CT: control target
= control target key end

     0   :  { %s689_s12 = smov 0   ;;  %s691_s13 = smov 0   ;;  %s746_s0 = inlined_call_operand.vmem [shape: f32[2,8,32], index: 0, kind: input, shape index: {}]   ;;  %s747_s1 = inlined_call_operand.vmem [shape: f32[2,8,32], index: 1, kind: input, shape index: {}]   ;;  %s748_s2 = inlined_call_operand.vmem [shape: f32[2,8,32], index: 2, kind: input, shape index: {}]   ;;  %s749_s3 = inlined_call_operand.vmem [shape: f32[2,8,32], index: 3, kind: output, shape index: {}]  }
   0x1   :  { %s693_s14 = smov 0  }
   0x2 LB: > { %s32_s15 = sadd.s32 1, %s659_s13  ;;  %p581_p0 = scmp.ge.s32.totalorder %s663_s14, 1  ;;  %s663_s14 = sphi %s693_s14, %s13_s14   ;;  %s659_s13 = sphi %s691_s13, %s751_s13   ;;  %s655_s12 = sphi %s689_s12, %s750_s12  }
   0x3   : > { %p34_p1 = scmp.ge.s32.totalorder %s32_s15, 2  ;;  %p190_p2 = scmp.lt.s32.totalorder %s663_s14, 3 }
   0x5   : > { %s753_s15 = smov (%p34_p1, %s32_s15), 0  ;;  %p191_p3 = pnand %p581_p0, %p190_p2 }
   0x6   : > { %p232_p4 = scmp.lt.s32.totalorder (!%p191_p3), %s655_s12, 1 }
   0x7   : > { %194 = sbr.rel (%p191_p3) target bundleno = 785 (0x311), region = 32 }
   0xc   : > { %vm267_vm0 = vcmask 261120   ;;  %v665_v0 = vmov 0.0   ;;  %vm666_vm1 = vmmov 0   ;;  %s755_s12 = smov (!%p232_p4, %s655_s12), 1  ;;  %vm264_vm2 = vcmask 7168  }
   0xd   : > { %595 = vmatprep.subr.mxu0 %v665_v0  ;;  %268 = vst.msk [vmem:[#allocation4] sm:$0xff] %vm267_vm0, %v665_v0  ;;  %597 = vmatprep.mubr.msk.f32.mxu0 %vm666_vm1, %v665_v0  ;;  %s708_s16 = sshll.u32 %s755_s12, 3  ;;  %v667_v3 = vmov -inf   ;;  %vm350_vm3 = vcmask 64512   ;;  %v668_v7 = vmov 0  }
   0xe   : > { %600 = vmatprep.subr.mxu1 %v665_v0  ;;  %602 = vmatprep.mubr.msk.f32.mxu1 %vm666_vm1, %v665_v0  ;;  %s245_s19 = scalar_lea.vmem %s747_s1, %s708_s16  ;;  %s238_s22 = scalar_lea.vmem %s746_s0, %s708_s16  ;;  %265 = vst.msk [vmem:[#allocation2] sm:$0xff] %vm264_vm2, %v667_v3  ;;  %266 = vst.msk [vmem:[#allocation3] sm:$0xff] %vm264_vm2, %v665_v0 }
   0xf   : > { %v270_v1 = vld [vmem:[%s245_s19] sm:$0xff]  ;;  %633 = vset.pattern.permute.xlu0 %v668_v7  ;;  %634 = vset.pattern.permute.xlu1 %v668_v7  ;;  %s252_s25 = scalar_lea.vmem %s748_s2, %s708_s16  ;;  %s259_s28 = scalar_lea.vmem %s749_s3, %s708_s16 }
  0x10   : > { %596 = vmatpush3.xpose.msk.msra.mxu0 %vm267_vm0, %v270_v1  ;;  %v269_v2 = vld [vmem:[%s238_s22] sm:$0xff] }
  0x11   : > { %v271_v12 = vld [vmem:[%s252_s25] sm:$0xff] }
  0x12   : > { %601 = vmatpush3.msra.mxu1 %v271_v12 }
  0x13   : > { %598 = vmatmul.mubr.msk.f32.vlgmr.msra.gmra.mxu0 %vm267_vm0, %v269_v2 }
  0x14   : > { %v374_v26 = vld [vmem:[#allocation4] sm:$0xff] }
  0x15   : > { %v349_v8 = vld [vmem:[#allocation2] sm:$0xff]  ;;  %v366_v20 = vld [vmem:[#allocation3] sm:$0xff] }
  0xd3   : > { %v345_v4 = vpop.f32.mrf.mxu0 }
  0xd4   : > { %v351_v5 = vsel %vm350_vm3, %v345_v4, -inf }
  0xd5   : > { %352 = vmax.xlane.f32.xlu0 %v351_v5  ;;  %v599_v6 = vpop.f32.mrf.mxu0 }
 0x15e   : > { %v353_v9 = vpop.xlane.xlu0 %352 }
 0x15f   : > { %v354_v10 = vmax.f32 %v349_v8, %v353_v9 }
 0x161   : > { %v355_v11 = vsub.f32 %v349_v8, %v354_v10  ;;  %456 = vst.msk [vmem:[#allocation2] sm:$0xff] %vm264_vm2, %v354_v10  ;;  %360 = vperm.xlu0 %633, %v354_v10  }
 0x163   : > { %v356_v17 = vmul.f32 1.442695, %v355_v11 }
 0x1dc   : > { %v361_v13 = vpop.permute.xlu0 %360 }
 0x1dd   : > { %v363_v14 = vsub.f32 %v345_v4, %v361_v13 }
 0x1df   : > { %v364_v15 = vmul.f32 1.442695, %v363_v14 }
 0x1e1   : > { %635 = vpow2.f32 %v364_v15 }
 0x1e2   : > { %637 = vpow2.f32 %v356_v17 }
 0x1ee   : > { %v636_v16 = vpop.eup %635 }
 0x1ef   : > { %603 = vmatmul.mubr.msk.f32.vlgmr.msra.gmra.mxu1 %vm350_vm3, %v636_v16  ;;  %v368_v18 = vsel %vm350_vm3, %v636_v16, 0.0  ;;  %v638_v19 = vpop.eup %637 }
 0x1f0   : > { %369 = vadd.xlane.f32.xlu1 %v368_v18  ;;  %v367_v21 = vmul.f32 %v638_v19, %v366_v20 }
 0x201   : > { %377 = vperm.xlu1 %634, %v638_v19  }
 0x279   : > { %v370_v22 = vpop.xlane.xlu1 %369 }
 0x27a   : > { %v371_v23 = vadd.f32 %v370_v22, %v367_v21 }
 0x27c   : > { %373 = vst.msk [vmem:[#allocation3] sm:$0xff] %vm264_vm2, %v371_v23 }
 0x27d   : > { %v378_v27 = vpop.permute.xlu1 %377 }
 0x27e   : > { %v380_v28 = vmul.f32 %v378_v27, %v374_v26 }
 0x283   : > { %v461_v24 = vld [vmem:[#allocation3] sm:$0xff] }
 0x284   : > { %639 = vrcp.f32 %v461_v24 }
 0x291   : > { %v640_v25 = vpop.eup %639 }
 0x292   : > { %465 = vperm.xlu1 %634, %v640_v25  }
 0x2af   : > { %v450_v29 = vpop.f32.mrf.mxu1 }
 0x2b0   : > { %v454_v30 = vadd.f32 %v450_v29, %v380_v28 }
 0x2b1   : > { %v604_v31 = vpop.f32.mrf.mxu1 }
 0x2b2   : > { %455 = vst.msk [vmem:[#allocation4] sm:$0xff] %vm267_vm0, %v454_v30 }
 0x2b9   : > { %v460_v32 = vld [vmem:[#allocation4] sm:$0xff] }
 0x30d   : > { %v466_v33 = vpop.permute.xlu1 %465 }
 0x30e   : > { %v468_v34 = vmul.f32 %v466_v33, %v460_v32 }
 0x310   : > { %469 = vst.msk [vmem:[%s259_s28] sm:$0xff] %vm267_vm0, %v468_v34 }
 0x311 PF: > { %s13_s14 = sadd.s32 1, %s663_s14   ;;  %s750_s12 = smov %s659_s13 }
 0x312   : > { %p10_p5 = scmp.ge.s32.totalorder %s13_s14, 4   ;;  %s751_s13 = smov %s753_s15 }
 0x314   :  { %12 = sbr.rel (!%p10_p5) target bundleno = 2 (0x2), region = 76 }

// kernel: multi_head_attention.9
= control target key start
LH: loop header
LB: loop body
LE: loop exit
PB: predicated region body
PF: predicated region fallthrough
CT: control target
= control target key end

     0   :  { %vm19_vm0 = vcmask 261120   ;;  %v194_v3 = vmov 0.0   ;;  %s250_s0 = inlined_call_operand.vmem [shape: f32[16,32], index: 0, kind: input, shape index: {}]   ;;  %s251_s1 = inlined_call_operand.vmem [shape: f32[32,32], index: 1, kind: input, shape index: {}]   ;;  %s252_s2 = inlined_call_operand.vmem [shape: f32[1,32], index: 2, kind: input, shape index: {}]   ;;  %s253_s3 = inlined_call_operand.hbm [shape: f32[16,32], index: 3, kind: output, shape index: {}]  }
   0x1   :  { %v27_v0 = vld [vmem:[%s251_s1 + $0x18] sm:$0xff]  ;;  %v26_v1 = vld [vmem:[%s251_s1 + $0x10] sm:$0xff]  ;;  %v22_v2 = vld [vmem:[%s250_s0] sm:$0xff]  ;;  %21 = vst.msk [vmem:[#allocation2 + $0x8] sm:$0xff] %vm19_vm0, %v194_v3 }
   0x2   :  { %157 = vmatprep.subr.mxu0 %v27_v0  ;;  %20 = vst.msk [vmem:[#allocation2] sm:$0xff] %vm19_vm0, %v194_v3  ;;  %v25_v4 = vld [vmem:[%s251_s1 + $0x8] sm:$0xff]  ;;  %165 = vmatprep.mubr.msk.f32.mxu0 %vm19_vm0, %v22_v2 }
   0x3   :  { %158 = vmatpush3.msra.mxu0 %v27_v0 }
   0x4   :  { %8 = vsyncpa [#allocation4], 0  ;;  %159 = vmatprep.subr.mxu0 %v26_v1  ;;  %v24_v5 = vld [vmem:[%s251_s1] sm:$0xff]  ;;  %v23_v6 = vld [vmem:[%s250_s0 + $0x8] sm:$0xff]  ;;  %s195_s25 = smov [#allocation3]  }
   0x5   :  { %160 = vmatpush3.msra.mxu0 %v26_v1  ;;  %v150_v13 = vld [vmem:[%s252_s2] ss:$0 sm:$0xff]  ;;  %s137_s0 = sshll.u32 %s195_s25, 4  ;;  %s138_s0 = int_to_ptr.vmem [resolvable:$true] %s137_s0 }
   0x6   :  { %161 = vmatprep.subr.mxu0 %v25_v4  ;;  %s172_s26 = scalar_lea.vmem %s138_s0, 256  ;;  %p177_p1 = scmp.lt.s32.totalorder %s138_s0, %s138_s0 }
   0x7   :  { %162 = vmatpush3.msra.mxu0 %v25_v4  ;;  %p173_p0 = scmp.ne.s32.totalorder %s138_s0, %s172_s26  ;;  %p178_p2 = scmp.lt.s32.totalorder %s172_s26, %s172_s26 }
   0x8   :  { %163 = vmatprep.subr.mxu0 %v24_v5  ;;  %v29_v7 = vld [vmem:[#allocation2 + $0x8] sm:$0xff] }
   0x9   :  { %164 = vmatpush3.msra.mxu0 %v24_v5  ;;  %v28_v9 = vld [vmem:[#allocation2] sm:$0xff]  ;;  %p179_p3 = por %p178_p2, %p177_p1 }
   0xa   :  { %166 = vmatmul.mubr.msk.f32.vlgmr.msra.gmra.mxu0 %vm19_vm0, %v23_v6 }
   0xb   :  { %p180_p4 = pnand %p179_p3, %p173_p0 }
  0xca   :  { %v167_v8 = vpop.f32.mrf.mxu0 }
  0xcb   :  { %v113_v10 = vadd.f32 %v167_v8, %v29_v7 }
  0xcc   :  { %v103_v11 = vpop.f32.mrf.mxu0 }
  0xcd   :  { %115 = vst.msk [vmem:[#allocation2 + $0x8] sm:$0xff] %vm19_vm0, %v113_v10  ;;  %v112_v12 = vadd.f32 %v103_v11, %v28_v9 }
  0xcf   :  { %114 = vst.msk [vmem:[#allocation2] sm:$0xff] %vm19_vm0, %v112_v12 }
  0xd4   :  { %v120_v14 = vld [vmem:[#allocation2 + $0x8] sm:$0xff] }
  0xd5   :  { %v129_v15 = vadd.f32 %v150_v13, %v120_v14 }
  0xd6   :  { %v119_v16 = vld [vmem:[#allocation2] sm:$0xff] }
  0xd7   :  { %v128_v17 = vadd.f32 %v150_v13, %v119_v16  ;;  %131 = vst.msk [vmem:[#allocation3 + $0x8] sm:$0xff] %vm19_vm0, %v129_v15 }
  0xd9   :  { %130 = vst.msk [vmem:[#allocation3] sm:$0xff] %vm19_vm0, %v128_v17 }
  0xda   :  { %183 = shalt.err (!%p180_p4)
}
  0xdb   :  { %s196_s27 = smov 128   ;;  %s197_s2 = smov 8  }
  0xdc   :  { %143 = dma.vmem_to_hbm [thread:$0]  %s138_s0, 256, %s253_s3, [#allocation4], %s196_s27, %s196_s27, %s197_s2  }
  0xdd   :  { %192 = dma.done.wait [#allocation4], 256  }
  0xde   :  { %193 = vsyncadd [#allocation4], 4294967040 }
  0xdf   :  { %147 = vsyncpa [#allocation4], 1 }

</bundles_post_ra>
